<compile_context>
chip_gen: v6e
topology: v6e:2x2x1
jax: 0.10.0
libtpu: 0.0.40
codegen_flags: <defaults>
</compile_context>

<pallas_src>
import functools

import jax
import jax.numpy as jnp
from jax.experimental import pallas as pl
from jax.experimental.pallas import tpu as pltpu


def _round_up(x, m):
    return ((x + m - 1) // m) * m


def cbow_kernel(ids_ref, emb_ref, w1_ref, b1_ref, w2_ref, b2_ref, out_ref,
                flat_ref, *, two_c, e_pad, v_real):
    # ids_ref : (2C,)             int32 SMEM  context token ids (scalar path)
    # emb_ref : (V, E_pad)        f32   VMEM  embedding table, E zero-padded
    # w1_ref  : (2C*E_pad, H_pad) f32   VMEM  linear1 weight (transposed, padded)
    # b1_ref  : (1, H_pad)        f32
    # w2_ref  : (H_pad, V_pad)    f32         linear2 weight (transposed, padded)
    # b2_ref  : (1, V_pad)        f32
    # out_ref : (1, V_pad)        f32         log-probs (padded lanes sliced off outside)
    # flat_ref: (1, 2C*E_pad)     f32 scratch the "view(1, -1)" flattened embedding

    # --- embedding lookup: direct row gather via SMEM scalar ids (no one-hot) ---
    for i in range(two_c):                               # 2C is tiny; static unroll
        row = emb_ref[pl.ds(ids_ref[i], 1), :]           # (1, E_pad) dynamic row load
        flat_ref[:, i * e_pad:(i + 1) * e_pad] = row     # lane-aligned (128-mult) write

    # --- linear1 as ONE (1, 2C*E_pad) @ (2C*E_pad, H_pad) contraction ---
    hid = jnp.dot(flat_ref[...], w1_ref[...],
                  preferred_element_type=jnp.float32) + b1_ref[...]
    hid = jnp.maximum(hid, 0.0)                          # ReLU

    # --- linear2 ---
    out = jnp.dot(hid, w2_ref[...],
                  preferred_element_type=jnp.float32) + b2_ref[...]   # (1, V_pad)

    # --- mask padded vocab lanes, then log_softmax along dim=1 (all f32) ---
    col = jax.lax.broadcasted_iota(jnp.int32, out.shape, 1)
    out = jnp.where(col < v_real, out, -1e30)
    m = jnp.max(out, axis=-1, keepdims=True)
    lse = m + jnp.log(jnp.sum(jnp.exp(out - m), axis=-1, keepdims=True))
    out_ref[...] = out - lse


def cbow_forward(ids, emb, w1, b1, w2, b2):
    """ids: (2C,) int; emb: (V,E); w1: (2C*E, H); b1: (H,); w2: (H,V); b2: (V,)."""
    two_c = ids.shape[0]
    V, E = emb.shape
    H = w1.shape[1]

    E_pad = _round_up(E, 128)
    H_pad = _round_up(H, 128)
    V_pad = _round_up(V, 128)

    # --- zero-pad every lane dimension to a multiple of 128 (wrapper side) ---
    emb_p = jnp.zeros((V, E_pad), jnp.float32).at[:, :E].set(emb)
    w1_3d = w1.reshape(two_c, E, H)
    w1_p = (jnp.zeros((two_c, E_pad, H_pad), jnp.float32)
            .at[:, :E, :H].set(w1_3d)
            .reshape(two_c * E_pad, H_pad))
    b1_p = jnp.zeros((1, H_pad), jnp.float32).at[0, :H].set(b1)
    w2_p = jnp.zeros((H_pad, V_pad), jnp.float32).at[:H, :V].set(w2)
    b2_p = jnp.zeros((1, V_pad), jnp.float32).at[0, :V].set(b2)
    ids_i32 = ids.astype(jnp.int32)

    kernel = functools.partial(cbow_kernel, two_c=two_c, e_pad=E_pad, v_real=V)

    vmem = pl.BlockSpec(memory_space=pltpu.MemorySpace.VMEM)
    smem = pl.BlockSpec(memory_space=pltpu.MemorySpace.SMEM)

    bytes_accessed = 4 * (emb_p.size + w1_p.size + b1_p.size +
                          w2_p.size + b2_p.size + V_pad) + 4 * two_c

    out_padded = pl.pallas_call(
        kernel,
        out_shape=jax.ShapeDtypeStruct((1, V_pad), jnp.float32),
        in_specs=[smem, vmem, vmem, vmem, vmem, vmem],
        out_specs=vmem,
        scratch_shapes=[pltpu.VMEM((1, two_c * E_pad), jnp.float32)],
        compiler_params=pltpu.CompilerParams(vmem_limit_bytes=8 * 1024 * 1024),
        cost_estimate=pl.CostEstimate(
            flops=2 * (two_c * E_pad * H_pad + H_pad * V_pad),
            transcendentals=V_pad + 1,
            bytes_accessed=bytes_accessed),
    )(ids_i32, emb_p, w1_p, b1_p, w2_p, b2_p)

    return out_padded[:, :V]


def cbow_reference(ids, emb, w1, b1, w2, b2):
    e = emb[ids].reshape(1, -1)
    h = jnp.maximum(e @ w1 + b1, 0.0)
    o = h @ w2 + b2
    return jax.nn.log_softmax(o, axis=1)


if __name__ == "__main__":
    # Sizes implied by the module: vocab_size = len(set(words)) = 13, embd_size = 100.
    # context_size / hidden_size come from the training script; use 2 / 64.
    vocab_size = 13
    embd_size = 100
    context_size = 2
    hidden_size = 64
    two_c = 2 * context_size

    key = jax.random.PRNGKey(0)
    k_emb, k_w1, k_b1, k_w2, k_b2, k_ids = jax.random.split(key, 6)

    # Deterministic synthetic parameters (shapes match nn.Embedding / nn.Linear).
    emb = jax.random.normal(k_emb, (vocab_size, embd_size), dtype=jnp.float32)
    lim1 = 1.0 / jnp.sqrt(two_c * embd_size)
    w1 = jax.random.uniform(k_w1, (two_c * embd_size, hidden_size),
                            minval=-lim1, maxval=lim1, dtype=jnp.float32)
    b1 = jax.random.uniform(k_b1, (hidden_size,),
                            minval=-lim1, maxval=lim1, dtype=jnp.float32)
    lim2 = 1.0 / jnp.sqrt(hidden_size)
    w2 = jax.random.uniform(k_w2, (hidden_size, vocab_size),
                            minval=-lim2, maxval=lim2, dtype=jnp.float32)
    b2 = jax.random.uniform(k_b2, (vocab_size,),
                            minval=-lim2, maxval=lim2, dtype=jnp.float32)

    # Context word indices (the PyTorch module's `inputs`).
    ids = jax.random.randint(k_ids, (two_c,), 0, vocab_size, dtype=jnp.int32)

    log_probs = cbow_forward(ids, emb, w1, b1, w2, b2)
    log_probs = jax.block_until_ready(log_probs)

    ref = cbow_reference(ids, emb, w1, b1, w2, b2)
    assert log_probs.shape == (1, vocab_size)
    assert jnp.allclose(log_probs, ref, atol=1e-4, rtol=1e-4), (
        f"mismatch: {log_probs} vs {ref}")

    print("KERNEL_OK")
</pallas_src>

<mosaic_0001>
module attributes {stable_mosaic.version = 11 : i64} {
  func.func @cbow_kernel(%arg0: memref<4xi32, #tpu.memory_space<smem>>, %arg1: memref<13x128xf32, #tpu.memory_space<vmem>>, %arg2: memref<512x128xf32, #tpu.memory_space<vmem>>, %arg3: memref<1x128xf32, #tpu.memory_space<vmem>>, %arg4: memref<128x128xf32, #tpu.memory_space<vmem>>, %arg5: memref<1x128xf32, #tpu.memory_space<vmem>>, %arg6: memref<1x128xf32, #tpu.memory_space<vmem>>, %arg7: memref<1x512xf32, #tpu.memory_space<vmem>>) attributes {dimension_semantics = [], scalar_prefetch = 0 : i64, scratch_operands = 1 : i64, tpu.core_type = #tpu.core_type<tc>} {
    %c0 = arith.constant 0 : index
    %0 = memref.load %arg0[%c0] : memref<4xi32, #tpu.memory_space<smem>>
    %1 = arith.index_cast %0 : i32 to index
    %c0_0 = arith.constant 0 : index
    %2 = vector.load %arg1[%1, %c0_0] : memref<13x128xf32, #tpu.memory_space<vmem>>, vector<1x128xf32>
    %c0_1 = arith.constant 0 : index
    %c0_2 = arith.constant 0 : index
    %3 = vector.load %arg7[%c0_1, %c0_2] : memref<1x512xf32, #tpu.memory_space<vmem>>, vector<1x128xf32>
    tpu.vector_store %arg7[%c0_1, %c0_2], %2 {strides = array<i32>} : memref<1x512xf32, #tpu.memory_space<vmem>>, vector<1x128xf32>,
    %c1 = arith.constant 1 : index
    %4 = memref.load %arg0[%c1] : memref<4xi32, #tpu.memory_space<smem>>
    %5 = arith.index_cast %4 : i32 to index
    %c0_3 = arith.constant 0 : index
    %6 = vector.load %arg1[%5, %c0_3] : memref<13x128xf32, #tpu.memory_space<vmem>>, vector<1x128xf32>
    %c0_4 = arith.constant 0 : index
    %c128 = arith.constant 128 : index
    %7 = vector.load %arg7[%c0_4, %c128] : memref<1x512xf32, #tpu.memory_space<vmem>>, vector<1x128xf32>
    tpu.vector_store %arg7[%c0_4, %c128], %6 {strides = array<i32>} : memref<1x512xf32, #tpu.memory_space<vmem>>, vector<1x128xf32>,
    %c2 = arith.constant 2 : index
    %8 = memref.load %arg0[%c2] : memref<4xi32, #tpu.memory_space<smem>>
    %9 = arith.index_cast %8 : i32 to index
    %c0_5 = arith.constant 0 : index
    %10 = vector.load %arg1[%9, %c0_5] : memref<13x128xf32, #tpu.memory_space<vmem>>, vector<1x128xf32>
    %c0_6 = arith.constant 0 : index
    %c256 = arith.constant 256 : index
    %11 = vector.load %arg7[%c0_6, %c256] : memref<1x512xf32, #tpu.memory_space<vmem>>, vector<1x128xf32>
    tpu.vector_store %arg7[%c0_6, %c256], %10 {strides = array<i32>} : memref<1x512xf32, #tpu.memory_space<vmem>>, vector<1x128xf32>,
    %c3 = arith.constant 3 : index
    %12 = memref.load %arg0[%c3] : memref<4xi32, #tpu.memory_space<smem>>
    %13 = arith.index_cast %12 : i32 to index
    %c0_7 = arith.constant 0 : index
    %14 = vector.load %arg1[%13, %c0_7] : memref<13x128xf32, #tpu.memory_space<vmem>>, vector<1x128xf32>
    %c0_8 = arith.constant 0 : index
    %c384 = arith.constant 384 : index
    %15 = vector.load %arg7[%c0_8, %c384] : memref<1x512xf32, #tpu.memory_space<vmem>>, vector<1x128xf32>
    tpu.vector_store %arg7[%c0_8, %c384], %14 {strides = array<i32>} : memref<1x512xf32, #tpu.memory_space<vmem>>, vector<1x128xf32>,
    %c0_9 = arith.constant 0 : index
    %c0_10 = arith.constant 0 : index
    %16 = vector.load %arg7[%c0_9, %c0_10] : memref<1x512xf32, #tpu.memory_space<vmem>>, vector<1x512xf32>
    %c0_11 = arith.constant 0 : index
    %c0_12 = arith.constant 0 : index
    %17 = vector.load %arg2[%c0_11, %c0_12] : memref<512x128xf32, #tpu.memory_space<vmem>>, vector<512x128xf32>
    %cst = arith.constant dense<0.000000e+00> : vector<1x128xf32>
    %18 = tpu.matmul %16, %17, %cst {dimension_numbers = #tpu.dot_dimension_numbers<[1], [0], [0], [1], [0, 0, 1, 1], [], []>} : vector<1x512xf32>, vector<512x128xf32>, vector<1x128xf32> -> vector<1x128xf32>
    %c0_13 = arith.constant 0 : index
    %c0_14 = arith.constant 0 : index
    %19 = vector.load %arg3[%c0_13, %c0_14] : memref<1x128xf32, #tpu.memory_space<vmem>>, vector<1x128xf32>
    %20 = arith.addf %18, %19 : vector<1x128xf32>
    %cst_15 = arith.constant 0.000000e+00 : f32
    %21 = vector.broadcast %cst_15 : f32 to vector<1x128xf32>
    %22 = arith.maximumf %20, %21 : vector<1x128xf32>
    %c0_16 = arith.constant 0 : index
    %c0_17 = arith.constant 0 : index
    %23 = vector.load %arg4[%c0_16, %c0_17] : memref<128x128xf32, #tpu.memory_space<vmem>>, vector<128x128xf32>
    %cst_18 = arith.constant dense<0.000000e+00> : vector<1x128xf32>
    %24 = tpu.matmul %22, %23, %cst_18 {dimension_numbers = #tpu.dot_dimension_numbers<[1], [0], [0], [1], [0, 0, 1, 1], [], []>} : vector<1x128xf32>, vector<128x128xf32>, vector<1x128xf32> -> vector<1x128xf32>
    %c0_19 = arith.constant 0 : index
    %c0_20 = arith.constant 0 : index
    %25 = vector.load %arg5[%c0_19, %c0_20] : memref<1x128xf32, #tpu.memory_space<vmem>>, vector<1x128xf32>
    %26 = arith.addf %24, %25 : vector<1x128xf32>
    %27 = tpu.iota {dimensions = array<i32: 1>} : vector<1x128xi32>
    %c13_i32 = arith.constant 13 : i32
    %28 = vector.broadcast %c13_i32 : i32 to vector<1x128xi32>
    %29 = arith.cmpi slt, %27, %28 : vector<1x128xi32>
    %cst_21 = arith.constant -1.000000e+30 : f32
    %30 = vector.broadcast %cst_21 : f32 to vector<1x128xf32>
    %31 = arith.select %29, %26, %30 : vector<1x128xi1>, vector<1x128xf32>
    %cst_22 = arith.constant dense<0xFF800000> : vector<1xf32>
    %32 = vector.multi_reduction <maximumf>, %31, %cst_22 [1] : vector<1x128xf32> to vector<1xf32>
    %33 = vector.shape_cast %32 : vector<1xf32> to vector<1x1xf32>
    %34 = vector.broadcast %33 : vector<1x1xf32> to vector<1x128xf32>
    %35 = arith.subf %31, %34 : vector<1x128xf32>
    %36 = math.exp %35 : vector<1x128xf32>
    %cst_23 = arith.constant dense<0.000000e+00> : vector<1xf32>
    %37 = vector.multi_reduction <add>, %36, %cst_23 [1] : vector<1x128xf32> to vector<1xf32>
    %38 = vector.shape_cast %37 : vector<1xf32> to vector<1x1xf32>
    %39 = math.log %38 : vector<1x1xf32>
    %40 = arith.addf %33, %39 : vector<1x1xf32>
    %41 = vector.broadcast %40 : vector<1x1xf32> to vector<1x128xf32>
    %42 = arith.subf %31, %41 : vector<1x128xf32>
    %c0_24 = arith.constant 0 : index
    %c0_25 = arith.constant 0 : index
    %43 = vector.load %arg6[%c0_24, %c0_25] : memref<1x128xf32, #tpu.memory_space<vmem>>, vector<1x128xf32>
    tpu.vector_store %arg6[%c0_24, %c0_25], %42 {strides = array<i32>} : memref<1x128xf32, #tpu.memory_space<vmem>>, vector<1x128xf32>,
    return
  }
}

</mosaic_0001>

<bundles_post_ra>
// kernel: tpu_custom_call.1
= control target key start
LH: loop header
LB: loop body
LE: loop exit
PB: predicated region body
PF: predicated region fallthrough
CT: control target
= control target key end

     0   :  { %11 = vsyncpa [#allocation6], 0  ;;  %s777_s0 = inlined_call_operand.hbm [shape: s32[4], index: 0, kind: input, shape index: {}]   ;;  %s778_s1 = inlined_call_operand.hbm [shape: f32[13,128], index: 1, kind: input, shape index: {}]   ;;  %s779_s2 = inlined_call_operand.hbm [shape: f32[512,128], index: 2, kind: input, shape index: {}]   ;;  %s780_s3 = inlined_call_operand.vmem [shape: f32[1,128], index: 3, kind: input, shape index: {}]   ;;  %s781_s4 = inlined_call_operand.hbm [shape: f32[128,128], index: 4, kind: input, shape index: {}]   ;;  %s782_s5 = inlined_call_operand.vmem [shape: f32[1,128], index: 5, kind: input, shape index: {}]   ;;  %s783_s6 = inlined_call_operand.hbm [shape: f32[1,128], index: 6, kind: output, shape index: {}]  }
   0x1   :  { %12 = vsyncpa [#allocation4], 0 }
   0x2   :  { %13 = vsyncpa [#allocation9], 0 }
   0x3   :  { %14 = vsyncpa [#allocation5], 0  ;;  %s685_s21 = smov [#allocation8]   ;;  %s686_s23 = smov [#allocation7]  }
   0x4   :  { %s40_s22 = sshll.u32 %s685_s21, 4  ;;  %s28_s24 = sshll.u32 %s686_s23, 4  ;;  %s41_s22 = int_to_ptr.vmem [resolvable:$true] %s40_s22  ;;  %s29_s24 = int_to_ptr.vmem [resolvable:$true] %s28_s24 }
   0x5   :  { %s597_s25 = scalar_lea.vmem %s41_s22, 8192  ;;  %p602_p1 = scmp.lt.s32.totalorder %s41_s22, %s41_s22 }
   0x6   :  { %p598_p0 = scmp.ne.s32.totalorder %s41_s22, %s597_s25  ;;  %p603_p2 = scmp.lt.s32.totalorder %s597_s25, %s597_s25 }
   0x8   :  { %p604_p3 = por %p603_p2, %p602_p1 }
   0xa   :  { %p605_p4 = pnand %p604_p3, %p598_p0 }
   0xc   :  { %608 = shalt.err (!%p605_p4)
}
   0xd   :  { %s687_s26 = smov 128   ;;  %s688_s27 = smov 8  }
   0xe   :  { %46 = dma.hbm_to_vmem [thread:$0]  %s779_s2, 8192, %s41_s22, [#allocation9], %s687_s26, %s687_s26, %s688_s27  }
   0xf   :  { %s689_s30 = smov [#allocation3]   ;;  %s625_s9 = scalar_lea.vmem %s29_s24, 256 }
  0x10   :  { %22 = dma.hbm_to_smem %s777_s0, 16, %s689_s30, [#allocation6]  }
  0x11   :  { %p626_p5 = scmp.ne.s32.totalorder %s29_s24, %s625_s9  ;;  %p630_p6 = scmp.lt.s32.totalorder %s29_s24, %s29_s24 }
  0x12   :  { %p631_p7 = scmp.lt.s32.totalorder %s625_s9, %s625_s9 }
  0x14   :  { %p632_p8 = por %p631_p7, %p630_p6 }
  0x16   :  { %p633_p9 = pnand %p632_p8, %p626_p5 }
  0x18   :  { %636 = shalt.err (!%p633_p9)
}
  0x19   :  { %34 = dma.hbm_to_vmem [thread:$0]  %s778_s1, 256, %s29_s24, [#allocation4], %s687_s26, %s687_s26, %s688_s27  }
  0x1a   :  { %s690_s12 = smov [#allocation10]  }
  0x1b   :  { %s54_s13 = sshll.u32 %s690_s12, 4  ;;  %s55_s13 = int_to_ptr.vmem [resolvable:$true] %s54_s13 }
  0x1c   :  { %s645_s2 = scalar_lea.vmem %s55_s13, 2048  ;;  %p650_p11 = scmp.lt.s32.totalorder %s55_s13, %s55_s13 }
  0x1d   :  { %p646_p10 = scmp.ne.s32.totalorder %s55_s13, %s645_s2  ;;  %p651_p12 = scmp.lt.s32.totalorder %s645_s2, %s645_s2 }
  0x1f   :  { %p652_p13 = por %p651_p12, %p650_p11 }
  0x21   :  { %p653_p0 = pnand %p652_p13, %p646_p10 }
  0x23   :  { %656 = shalt.err (!%p653_p0)
}
  0x24   :  { %60 = dma.hbm_to_vmem [thread:$0]  %s781_s4, 2048, %s55_s13, [#allocation9], %s687_s26, %s687_s26, %s688_s27  }
  0x25   :  { %677 = dma.done.wait [#allocation6], 16  }
  0x26   :  { %678 = vsyncadd [#allocation6], 4294967280 }
  0x27   :  { %679 = dma.done.wait [#allocation4], 256  }
  0x28   :  { %680 = vsyncadd [#allocation4], 4294967040 }
  0x29   :  { %681 = dma.done.wait [#allocation9], 10240  }
  0x2a   :  { %682 = vsyncadd [#allocation9], 4294957056 }
  0x2b   :  { %75 = sfence }
  0x2c   :  { %v128_v0 = vld [vmem:[#allocation8 + $0xf8] sm:$0xff]  ;;  %v127_v4 = vld [vmem:[#allocation8 + $0xf0] sm:$0xff]  ;;  %v126_v8 = vld [vmem:[#allocation8 + $0xe8] sm:$0xff]  ;;  %s741_s1 = sld [smem:[#allocation3]]  ;;  %v79_v36 = vlaneseq  ;;  %vm692_vm1 = vmmov 0   ;;  %vm415_vm3 = vcmask 1040384  }
  0x2d   :  { %v160_v1 = vld [vmem:[#allocation8 + $0x1f8] sm:$0xff]  ;;  %454 = vmatprep.subr.mxu0 %v128_v0  ;;  %v159_v5 = vld [vmem:[#allocation8 + $0x1f0] sm:$0xff]  ;;  %v158_v9 = vld [vmem:[#allocation8 + $0x1e8] sm:$0xff]  ;;  %s743_s4 = sld [smem:[#allocation3 + $0x1]] }
  0x2e   :  { %v112_v2 = vld [vmem:[#allocation8 + $0x78] sm:$0xff]  ;;  %489 = vmatprep.subr.mxu1 %v160_v1  ;;  %v111_v6 = vld [vmem:[#allocation8 + $0x70] sm:$0xff]  ;;  %v110_v10 = vld [vmem:[#allocation8 + $0x68] sm:$0xff]  ;;  %s745_s15 = sld [smem:[#allocation3 + $0x2]]  ;;  %vm750_vm0 = vcmp.lt.s32.totalorder %v79_v36, 128  ;;  %v164_v58 = vshrl.u32 %v79_v36, 7 }
  0x2f   :  { %v144_v3 = vld [vmem:[#allocation8 + $0x178] sm:$0xff]  ;;  %455 = vmatpush3.msra.mxu0 %v112_v2  ;;  %v143_v7 = vld [vmem:[#allocation8 + $0x170] sm:$0xff]  ;;  %v142_v11 = vld [vmem:[#allocation8 + $0x168] sm:$0xff]  ;;  %s747_s16 = sld [smem:[#allocation3 + $0x3]] }
  0x30   :  { %490 = vmatpush3.msra.mxu1 %v144_v3  ;;  %456 = vmatprep.subr.mxu0 %v127_v4  ;;  %v125_v12 = vld [vmem:[#allocation8 + $0xe0] sm:$0xff]  ;;  %v124_v16 = vld [vmem:[#allocation8 + $0xd8] sm:$0xff]  ;;  %v123_v20 = vld [vmem:[#allocation8 + $0xd0] sm:$0xff]  ;;  %v169_v3 = vsub.s32 1, %v164_v58  ;;  %v177_v4 = vsub.s32 3, %v164_v58 }
  0x31   :  { %491 = vmatprep.subr.mxu1 %v159_v5  ;;  %457 = vmatpush3.msra.mxu0 %v111_v6  ;;  %v157_v13 = vld [vmem:[#allocation8 + $0x1e0] sm:$0xff]  ;;  %v156_v17 = vld [vmem:[#allocation8 + $0x1d8] sm:$0xff]  ;;  %v155_v21 = vld [vmem:[#allocation8 + $0x1d0] sm:$0xff]  ;;  %v165_v5 = vsub.s32 0, %v164_v58 }
  0x32   :  { %492 = vmatpush3.msra.mxu1 %v143_v7  ;;  %458 = vmatprep.subr.mxu0 %v126_v8  ;;  %v109_v14 = vld [vmem:[#allocation8 + $0x60] sm:$0xff]  ;;  %v108_v18 = vld [vmem:[#allocation8 + $0x58] sm:$0xff]  ;;  %v107_v22 = vld [vmem:[#allocation8 + $0x50] sm:$0xff]  ;;  %s77_s17 = scalar_lea.vmem [#allocation7], %s741_s1  ;;  %v173_v8 = vsub.s32 2, %v164_v58 }
  0x33   :  { %493 = vmatprep.subr.mxu1 %v158_v9  ;;  %v141_v15 = vld [vmem:[#allocation8 + $0x160] sm:$0xff]  ;;  %459 = vmatpush3.msra.mxu0 %v110_v10  ;;  %v140_v19 = vld [vmem:[#allocation8 + $0x158] sm:$0xff]  ;;  %v139_v23 = vld [vmem:[#allocation8 + $0x150] sm:$0xff]  ;;  %s85_s18 = scalar_lea.vmem [#allocation7], %s743_s4 }
  0x34   :  { %494 = vmatpush3.msra.mxu1 %v142_v11  ;;  %460 = vmatprep.subr.mxu0 %v125_v12  ;;  %v122_v24 = vld [vmem:[#allocation8 + $0xc8] sm:$0xff]  ;;  %v121_v28 = vld [vmem:[#allocation8 + $0xc0] sm:$0xff]  ;;  %v120_v32 = vld [vmem:[#allocation8 + $0xb8] sm:$0xff]  ;;  %s89_s19 = scalar_lea.vmem [#allocation7], %s745_s15 }
  0x35   :  { %495 = vmatprep.subr.mxu1 %v157_v13  ;;  %461 = vmatpush3.msra.mxu0 %v109_v14  ;;  %v154_v25 = vld [vmem:[#allocation8 + $0x1c8] sm:$0xff]  ;;  %v153_v29 = vld [vmem:[#allocation8 + $0x1c0] sm:$0xff]  ;;  %v152_v33 = vld [vmem:[#allocation8 + $0x1b8] sm:$0xff]  ;;  %s93_s20 = scalar_lea.vmem [#allocation7], %s747_s16 }
  0x36   :  { %496 = vmatpush3.msra.mxu1 %v141_v15  ;;  %462 = vmatprep.subr.mxu0 %v124_v16  ;;  %v106_v26 = vld [vmem:[#allocation8 + $0x48] sm:$0xff]  ;;  %v105_v30 = vld [vmem:[#allocation8 + $0x40] sm:$0xff]  ;;  %v104_v34 = vld [vmem:[#allocation8 + $0x38] sm:$0xff] }
  0x37   :  { %497 = vmatprep.subr.mxu1 %v156_v17  ;;  %463 = vmatpush3.msra.mxu0 %v108_v18  ;;  %v138_v27 = vld [vmem:[#allocation8 + $0x148] sm:$0xff]  ;;  %v137_v31 = vld [vmem:[#allocation8 + $0x140] sm:$0xff]  ;;  %v136_v35 = vld [vmem:[#allocation8 + $0x138] sm:$0xff]  ;;  %v691_v17 = vmov 0.0  }
  0x38   :  { %498 = vmatpush3.msra.mxu1 %v140_v19  ;;  %464 = vmatprep.subr.mxu0 %v123_v20  ;;  %v119_v37 = vld [vmem:[#allocation8 + $0xb0] sm:$0xff]  ;;  %v118_v41 = vld [vmem:[#allocation8 + $0xa8] sm:$0xff]  ;;  %v117_v45 = vld [vmem:[#allocation8 + $0xa0] sm:$0xff] }
  0x39   :  { %499 = vmatprep.subr.mxu1 %v155_v21  ;;  %465 = vmatpush3.msra.mxu0 %v107_v22  ;;  %v151_v38 = vld [vmem:[#allocation8 + $0x1b0] sm:$0xff]  ;;  %v150_v42 = vld [vmem:[#allocation8 + $0x1a8] sm:$0xff]  ;;  %v149_v47 = vld [vmem:[#allocation8 + $0x1a0] sm:$0xff] }
  0x3a   :  { %500 = vmatpush3.msra.mxu1 %v139_v23  ;;  %466 = vmatprep.subr.mxu0 %v122_v24  ;;  %v103_v39 = vld [vmem:[#allocation8 + $0x30] sm:$0xff]  ;;  %v102_v43 = vld [vmem:[#allocation8 + $0x28] sm:$0xff]  ;;  %v101_v48 = vld [vmem:[#allocation8 + $0x20] sm:$0xff] }
  0x3b   :  { %501 = vmatprep.subr.mxu1 %v154_v25  ;;  %467 = vmatpush3.msra.mxu0 %v106_v26  ;;  %v135_v40 = vld [vmem:[#allocation8 + $0x130] sm:$0xff]  ;;  %v134_v44 = vld [vmem:[#allocation8 + $0x128] sm:$0xff]  ;;  %v133_v49 = vld [vmem:[#allocation8 + $0x120] sm:$0xff] }
  0x3c   :  { %502 = vmatpush3.msra.mxu1 %v138_v27  ;;  %468 = vmatprep.subr.mxu0 %v121_v28  ;;  %v78_v50 = vld [vmem:[%s77_s17] sm:$0x1]  ;;  %v116_v53 = vld [vmem:[#allocation8 + $0x98] sm:$0xff]  ;;  %v115_v59 = vld [vmem:[#allocation8 + $0x90] sm:$0xff] }
  0x3d   :  { %503 = vmatprep.subr.mxu1 %v153_v29  ;;  %469 = vmatpush3.msra.mxu0 %v105_v30  ;;  %v86_v51 = vld [vmem:[%s85_s18] sm:$0x1]  ;;  %v148_v54 = vld [vmem:[#allocation8 + $0x198] sm:$0xff]  ;;  %83 = vst.msk [vmem:[#allocation2] sm:$0x1] %vm750_vm0, %v78_v50  ;;  %v147_v60 = vld [vmem:[#allocation8 + $0x190] sm:$0xff] }
  0x3e   :  { %504 = vmatpush3.msra.mxu1 %v137_v31  ;;  %470 = vmatprep.subr.mxu0 %v120_v32  ;;  %v90_v52 = vld [vmem:[%s89_s19] sm:$0x1]  ;;  %87 = vst.msk [vmem:[#allocation2 + $0x1] sm:$0x1] %vm750_vm0, %v86_v51  ;;  %v100_v56 = vld [vmem:[#allocation8 + $0x18] sm:$0xff]  ;;  %v99_v61 = vld [vmem:[#allocation8 + $0x10] sm:$0xff] }
  0x3f   :  { %505 = vmatprep.subr.mxu1 %v152_v33  ;;  %471 = vmatpush3.msra.mxu0 %v104_v34  ;;  %91 = vst.msk [vmem:[#allocation2 + $0x2] sm:$0x1] %vm750_vm0, %v90_v52  ;;  %v94_v55 = vld [vmem:[%s93_s20] sm:$0x1]  ;;  %v132_v57 = vld [vmem:[#allocation8 + $0x118] sm:$0xff]  ;;  %v131_v62 = vld [vmem:[#allocation8 + $0x110] sm:$0xff] }
  0x40   :  { %506 = vmatpush3.msra.mxu1 %v136_v35  ;;  %472 = vmatprep.subr.mxu0 %v119_v37  ;;  %95 = vst.msk [vmem:[#allocation2 + $0x3] sm:$0x1] %vm750_vm0, %v94_v55  ;;  %v114_v63 = vld [vmem:[#allocation8 + $0x88] sm:$0xff]  ;;  %v113_v6 = vld [vmem:[#allocation8 + $0x80] sm:$0xff]  ;;  %v339_v16 = vld [vmem:[#allocation10 + $0x78] sm:$0xff] }
  0x41   :  { %507 = vmatprep.subr.mxu1 %v151_v38  ;;  %473 = vmatpush3.msra.mxu0 %v103_v39  ;;  %v146_v0 = vld [vmem:[#allocation8 + $0x188] sm:$0xff]  ;;  %v145_v7 = vld [vmem:[#allocation8 + $0x180] sm:$0xff]  ;;  %v338_v18 = vld [vmem:[#allocation10 + $0x70] sm:$0xff] }
  0x42   :  { %508 = vmatpush3.msra.mxu1 %v135_v40  ;;  %474 = vmatprep.subr.mxu0 %v118_v41  ;;  %v98_v1 = vld [vmem:[#allocation8 + $0x8] sm:$0xff]  ;;  %v97_v9 = vld [vmem:[#allocation8] sm:$0xff]  ;;  %v335_v21 = vld [vmem:[#allocation10 + $0x58] sm:$0xff] }
  0x43   :  { %509 = vmatprep.subr.mxu1 %v150_v42  ;;  %475 = vmatpush3.msra.mxu0 %v102_v43  ;;  %v130_v2 = vld [vmem:[#allocation8 + $0x108] sm:$0xff]  ;;  %v129_v10 = vld [vmem:[#allocation8 + $0x100] sm:$0xff]  ;;  %v334_v22 = vld [vmem:[#allocation10 + $0x50] sm:$0xff] }
  0x44   :  { %510 = vmatpush3.msra.mxu1 %v134_v44  ;;  %476 = vmatprep.subr.mxu0 %v117_v45  ;;  %v337_v19 = vld [vmem:[#allocation10 + $0x68] sm:$0xff]  ;;  %v336_v20 = vld [vmem:[#allocation10 + $0x60] sm:$0xff]  ;;  %v331_v25 = vld [vmem:[#allocation10 + $0x38] sm:$0xff]  ;;  %v412_v44 = vand.u32 127, %v79_v36 }
  0x45   :  { %511 = vmatprep.subr.mxu1 %v149_v47  ;;  %477 = vmatpush3.msra.mxu0 %v101_v48  ;;  %v333_v23 = vld [vmem:[#allocation10 + $0x48] sm:$0xff]  ;;  %v332_v24 = vld [vmem:[#allocation10 + $0x40] sm:$0xff]  ;;  %v330_v26 = vld [vmem:[#allocation10 + $0x30] sm:$0xff] }
  0x46   :  { %512 = vmatpush3.msra.mxu1 %v133_v49  ;;  %478 = vmatprep.subr.mxu0 %v116_v53  ;;  %v329_v27 = vld [vmem:[#allocation10 + $0x28] sm:$0xff]  ;;  %v328_v28 = vld [vmem:[#allocation10 + $0x20] sm:$0xff]  ;;  %v327_v29 = vld [vmem:[#allocation10 + $0x18] sm:$0xff]  ;;  %vm413_vm2 = vcmp.lt.s32.totalorder %v412_v44, 13 }
  0x47   :  { %513 = vmatprep.subr.mxu1 %v148_v54  ;;  %479 = vmatpush3.msra.mxu0 %v100_v56  ;;  %v96_v11 = vld [vmem:[#allocation2] sm:$0xf]  ;;  %v326_v30 = vld [vmem:[#allocation10 + $0x10] sm:$0xff]  ;;  %v324_v32 = vld [vmem:[#allocation10] sm:$0xff] }
  0x48   :  { %514 = vmatpush3.msra.mxu1 %v132_v57  ;;  %480 = vmatprep.subr.mxu0 %v115_v59  ;;  %v170_v12 = vrot.slane %v96_v11, %v169_v3  ;;  %v178_v13 = vrot.slane %v96_v11, %v177_v4  ;;  %v166_v14 = vrot.slane %v96_v11, %v165_v5  ;;  %v325_v31 = vld [vmem:[#allocation10 + $0x8] sm:$0xff] }
  0x49   :  { %515 = vmatprep.subr.mxu1 %v147_v60  ;;  %481 = vmatpush3.msra.mxu0 %v99_v61  ;;  %v174_v15 = vrot.slane %v96_v11, %v173_v8  ;;  %v161_v35 = vld [vmem:[%s780_s3] sm:$0x1]  ;;  %s693_s3 = smov [#allocation11]  }
  0x4a   :  { %516 = vmatpush3.msra.mxu1 %v131_v62  ;;  %482 = vmatprep.subr.mxu0 %v114_v63  ;;  %v340_v45 = vld [vmem:[%s782_s5] sm:$0x1]  ;;  %s436_s5 = sshll.u32 %s693_s3, 4  ;;  %s437_s5 = int_to_ptr.vmem [resolvable:$true] %s436_s5 }
  0x4b   :  { %517 = vmatprep.subr.mxu1 %v146_v0  ;;  %483 = vmatpush3.msra.mxu0 %v98_v1  ;;  %s657_s25 = scalar_lea.vmem %s437_s5, 16  ;;  %s661_s26 = scalar_lea.vmem %s437_s5, 32 }
  0x4c   :  { %518 = vmatpush3.msra.mxu1 %v130_v2  ;;  %484 = vmatprep.subr.mxu0 %v113_v6  ;;  %p658_p1 = scmp.ne.s32.totalorder %s437_s5, %s657_s25  ;;  %p662_p2 = scmp.lt.s32.totalorder %s437_s5, %s437_s5 }
  0x4d   :  { %519 = vmatprep.subr.mxu1 %v145_v7  ;;  %485 = vmatpush3.msra.mxu0 %v97_v9  ;;  %p663_p3 = scmp.lt.s32.totalorder %s661_s26, %s657_s25 }
  0x4e   :  { %520 = vmatpush3.msra.mxu1 %v129_v10  ;;  %247 = vmatprep.mubr.f32.mxu0 %v170_v12 }
  0x4f   :  { %317 = vmatprep.mubr.f32.mxu1 %v178_v13  ;;  %248 = vmatmul.mubr.f32.vlgmr.msra.gmra.mxu0 %v166_v14  ;;  %p664_p4 = por %p663_p3, %p662_p2 }
  0x50   :  { %318 = vmatmul.mubr.f32.vlgmr.msra.gmra.mxu1 %v174_v15  ;;  %541 = vmatprep.subr.mxu0 %v691_v17 }
  0x51   :  { %542 = vmatpush3.msra.mxu0 %v339_v16  ;;  %573 = vmatprep.mubr.msk.f32.mxu0 %vm692_vm1, %v691_v17  ;;  %p665_p5 = pnand %p664_p4, %p658_p1 }
  0x52   :  { %543 = vmatprep.subr.mxu0 %v691_v17 }
  0x53   :  { %544 = vmatpush3.msra.mxu0 %v338_v18 }
  0x54   :  { %545 = vmatprep.subr.mxu0 %v691_v17 }
  0x55   :  { %546 = vmatpush3.msra.mxu0 %v337_v19 }
  0x56   :  { %547 = vmatprep.subr.mxu0 %v691_v17 }
  0x57   :  { %548 = vmatpush3.msra.mxu0 %v336_v20 }
  0x58   :  { %549 = vmatprep.subr.mxu0 %v691_v17 }
  0x59   :  { %550 = vmatpush3.msra.mxu0 %v335_v21 }
  0x5a   :  { %551 = vmatprep.subr.mxu0 %v691_v17 }
  0x5b   :  { %552 = vmatpush3.msra.mxu0 %v334_v22 }
  0x5c   :  { %553 = vmatprep.subr.mxu0 %v691_v17 }
  0x5d   :  { %554 = vmatpush3.msra.mxu0 %v333_v23 }
  0x5e   :  { %555 = vmatprep.subr.mxu0 %v691_v17 }
  0x5f   :  { %556 = vmatpush3.msra.mxu0 %v332_v24 }
  0x60   :  { %557 = vmatprep.subr.mxu0 %v691_v17 }
  0x61   :  { %558 = vmatpush3.msra.mxu0 %v331_v25 }
  0x62   :  { %559 = vmatprep.subr.mxu0 %v691_v17 }
  0x63   :  { %560 = vmatpush3.msra.mxu0 %v330_v26 }
  0x64   :  { %561 = vmatprep.subr.mxu0 %v691_v17 }
  0x65   :  { %562 = vmatpush3.msra.mxu0 %v329_v27 }
  0x66   :  { %563 = vmatprep.subr.mxu0 %v691_v17 }
  0x67   :  { %564 = vmatpush3.msra.mxu0 %v328_v28 }
  0x68   :  { %565 = vmatprep.subr.mxu0 %v691_v17 }
  0x69   :  { %566 = vmatpush3.msra.mxu0 %v327_v29 }
  0x6a   :  { %567 = vmatprep.subr.mxu0 %v691_v17 }
  0x6b   :  { %568 = vmatpush3.msra.mxu0 %v326_v30 }
  0x6c   :  { %569 = vmatprep.subr.mxu0 %v691_v17 }
  0x6d   :  { %570 = vmatpush3.msra.mxu0 %v325_v31 }
  0x6e   :  { %571 = vmatprep.subr.mxu0 %v691_v17 }
  0x6f   :  { %572 = vmatpush3.msra.mxu0 %v324_v32 }
 0x10f   :  { %v486_v33 = vpop.f32.mrf.mxu0 }
 0x110   :  { %v521_v34 = vpop.f32.mrf.mxu1 }
 0x111   :  { %v487_v37 = vpop.f32.mrf.mxu0 }
 0x112   :  { %v522_v38 = vpop.f32.mrf.mxu1  ;;  %v488_v39 = vadd.f32 %v487_v37, %v486_v33 }
 0x113   :  { %v523_v41 = vadd.f32 %v522_v38, %v521_v34 }
 0x114   :  { %v250_v40 = vadd.f32 %v488_v39, %v161_v35 }
 0x116   :  { %v320_v42 = vadd.f32 %v523_v41, %v250_v40 }
 0x118   :  { %v323_v43 = vmax.f32 %v320_v42, 0.0 }
 0x11a   :  { %574 = vmatmul.mubr.f32.vlgmr.msra.gmra.mxu0 %v323_v43 }
 0x1da   :  { %v407_v46 = vpop.f32.mrf.mxu0 }
 0x1db   :  { %v408_v47 = vadd.f32 %v407_v46, %v340_v45 }
 0x1dc   :  { %v575_v48 = vpop.f32.mrf.mxu0 }
 0x1dd   :  { %v414_v49 = vsel %vm413_vm2, %v408_v47, -1e+30 }
 0x1de   :  { %v416_v50 = vsel %vm415_vm3, %v414_v49, -inf }
 0x1df   :  { %417 = vmax.xlane.f32.xlu0 %v416_v50 }
 0x268   :  { %v418_v51 = vpop.xlane.xlu0 %417 }
 0x269   :  { %v419_v52 = vsub.f32 %v414_v49, %v418_v51 }
 0x26b   :  { %v420_v53 = vmul.f32 1.442695, %v419_v52 }
 0x26d   :  { %585 = vpow2.f32 %v420_v53 }
 0x27a   :  { %v586_v54 = vpop.eup %585 }
 0x27b   :  { %v422_v55 = vsel %vm415_vm3, %v586_v54, 0.0 }
 0x27c   :  { %423 = vadd.xlane.f32.xlu0 %v422_v55 }
 0x305   :  { %v424_v36 = vpop.xlane.xlu0 %423 }
 0x306   :  { %587 = vlog2.f32 %v424_v36 }
 0x313   :  { %v588_v56 = vpop.eup %587 }
 0x314   :  { %v426_v57 = vmul.f32 0.6931472, %v588_v56 }
 0x316   :  { %v427_v58 = vadd.f32 %v426_v57, %v418_v51 }
 0x318   :  { %v428_v59 = vsub.f32 %v414_v49, %v427_v58 }
 0x31a   :  { %429 = vst [vmem:[#allocation11] sm:$0x1] %v428_v59 }
 0x31b   :  { %668 = shalt.err (!%p665_p5)
}
 0x31c   :  { %439 = dma.vmem_to_hbm [thread:$0]  %s437_s5, 16, %s783_s6, [#allocation5]  }
 0x31d   :  { %683 = dma.done.wait [#allocation5], 16  }
 0x31e   :  { %684 = vsyncadd [#allocation5], 4294967280 }
 0x31f   :  { %443 = vsyncpa [#allocation4], 1 }
 0x320   :  { %444 = vsyncpa [#allocation9], 1 }
 0x321   :  { %445 = vsyncpa [#allocation5], 1 }
 0x322   :  { %446 = vsyncpa [#allocation6], 1 }

</bundles_post_ra>
